<compile_context>
chip_gen: v7x
topology: tpu7x:2x2x1
jax: 0.10.0
libtpu: 0.0.40
codegen_flags: <defaults>
</compile_context>

<pallas_src>
import functools

import jax
import jax.numpy as jnp
from jax.experimental import pallas as pl
from jax.experimental.pallas import tpu as pltpu


def _round_up(x, m):
    return ((x + m - 1) // m) * m


def _device_kind():
    try:
        return jax.devices()[0].device_kind.lower()
    except Exception:
        return ""


def _layernorm_kernel(x_ref, w_ref, b_ref, o_ref, *, eps, bf16_final):
    # x_ref: (tm, D) tile of rows; w_ref/b_ref: (1, D) params broadcast over rows.
    x = x_ref[...]
    xf = x.astype(jnp.float32)
    # Fused single-pass statistics (f32 accumulation): E[x] and E[x^2].
    mean = jnp.mean(xf, axis=-1, keepdims=True)
    mean_sq = jnp.mean(xf * xf, axis=-1, keepdims=True)
    # Clamp guards cancellation and garbage in masked padding rows (never stored).
    var = jnp.maximum(mean_sq - mean * mean, 0.0)
    inv = jax.lax.rsqrt(var + eps)  # EUP rsqrt; divide becomes a VPU mul.
    if bf16_final:
        # bf16 VALU path (v6e/v7x): final full-tile pass + store in bf16.
        mean_c = mean.astype(x.dtype)
        inv_c = inv.astype(x.dtype)
        o_ref[...] = ((x - mean_c) * inv_c) * w_ref[...].astype(x.dtype) \
            + b_ref[...].astype(x.dtype)
    else:
        out = ((xf - mean) * inv) * w_ref[...].astype(jnp.float32) \
            + b_ref[...].astype(jnp.float32)
        o_ref[...] = out.astype(o_ref.dtype)


def _choose_row_tile(rows, d, in_dtype, out_dtype, max_tm,
                     tile_vmem_budget_bytes, num_tc):
    """Largest row-tile fitting the VMEM budget, balanced across grid/TCs."""
    in_size = jnp.dtype(in_dtype).itemsize
    out_size = jnp.dtype(out_dtype).itemsize
    # Sublane packing granularity: f32 -> 8 rows/vreg, bf16 -> 16, int8/fp8 -> 32.
    row_align = max(8, 32 // in_size)
    if rows <= row_align:
        return rows  # block equal to the full dim is always legal
    # Per-row footprint: double-buffered input + output pipeline tiles plus
    # ~2 f32 intermediates Mosaic materializes for the reductions/final pass.
    per_row_bytes = d * (2 * in_size + 2 * out_size + 2 * 4)
    tm_cap = max(row_align, tile_vmem_budget_bytes // per_row_bytes)
    tm = min(max_tm, tm_cap, rows)
    if tm >= rows:
        if num_tc >= 2:
            # v7x: split the single grid axis near-equally across the 2 TCs.
            return _round_up(pl.cdiv(rows, num_tc), row_align)
        return rows  # single-TC chip: one full block, no extra pipeline step
    # Partial last block would be a tiny masked remainder; rebalance to
    # near-equal blocks while keeping the same number of grid steps.
    tm = max(row_align, (tm // row_align) * row_align)
    g = pl.cdiv(rows, tm)
    return _round_up(pl.cdiv(rows, g), row_align)


def layer_norm(residual, w, b, *, eps=1e-5, max_tm=None,
               tile_vmem_budget_bytes=None, vmem_limit_bytes=None):
    """LayerNorm over the last axis. residual: [..., d_model]."""
    D = residual.shape[-1]
    rows = 1
    for s in residual.shape[:-1]:
        rows *= s
    x2d = residual.reshape(rows, D)
    w2d = w.reshape(1, D)
    b2d = b.reshape(1, D)

    kind = _device_kind()
    is_v7x = "v7" in kind
    is_v5e = ("v5e" in kind) or ("v5 lite" in kind) or ("v5lite" in kind)
    num_tc = 2 if is_v7x else 1

    # Chip-dependent defaults.
    if max_tm is None:
        max_tm = 4096 if is_v7x else 1024
    if tile_vmem_budget_bytes is None:
        tile_vmem_budget_bytes = (40 << 20) if is_v7x else (16 << 20)
    if vmem_limit_bytes is None:
        vmem_limit_bytes = (48 << 20) if is_v7x else (32 << 20)

    # bf16 final math only where the VPU has bf16 lanes (v6e/v7x, not v5e).
    bf16_final = (residual.dtype == jnp.bfloat16) and (not is_v5e)

    tm = _choose_row_tile(rows, D, residual.dtype, residual.dtype, max_tm,
                          tile_vmem_budget_bytes, num_tc)
    grid = (pl.cdiv(rows, tm),)

    kernel = functools.partial(_layernorm_kernel, eps=eps, bf16_final=bf16_final)

    itemsize = jnp.dtype(residual.dtype).itemsize
    cost = pl.CostEstimate(
        flops=7 * rows * D,
        transcendentals=rows,
        bytes_accessed=2 * rows * D * itemsize + 2 * D * jnp.dtype(w.dtype).itemsize,
    )

    out2d = pl.pallas_call(
        kernel,
        out_shape=jax.ShapeDtypeStruct((rows, D), residual.dtype),
        grid_spec=pltpu.PrefetchScalarGridSpec(
            num_scalar_prefetch=0,
            grid=grid,
            in_specs=[
                pl.BlockSpec((tm, D), lambda i: (i, 0)),
                pl.BlockSpec((1, D), lambda i: (0, 0)),
                pl.BlockSpec((1, D), lambda i: (0, 0)),
            ],
            out_specs=pl.BlockSpec((tm, D), lambda i: (i, 0)),
        ),
        compiler_params=pltpu.CompilerParams(
            dimension_semantics=("parallel",),
            vmem_limit_bytes=vmem_limit_bytes,
        ),
        cost_estimate=cost,
    )(x2d, w2d, b2d)

    return out2d.reshape(residual.shape)


def _reference(residual, w, b, eps):
    mean = jnp.mean(residual, axis=-1, keepdims=True)
    xc = residual - mean
    scale = jnp.sqrt(jnp.mean(xc * xc, axis=-1, keepdims=True) + eps)
    return (xc / scale) * w + b


if __name__ == "__main__":
    # Config defaults: d_model = 768, layer_norm_eps = 1e-5.
    d_model = 768
    eps = 1e-5

    key = jax.random.PRNGKey(0)
    k1, k2, k3, k4, k5 = jax.random.split(key, 5)

    # Parameter init matching the module (w = ones, b = zeros).
    w = jnp.ones((d_model,), dtype=jnp.float32)
    b = jnp.zeros((d_model,), dtype=jnp.float32)

    # Case 1: batch=2, position=8, f32.
    residual = jax.random.normal(k1, (2, 8, d_model), dtype=jnp.float32)
    out = jax.block_until_ready(layer_norm(residual, w, b, eps=eps))
    ref = _reference(residual, w, b, eps)
    assert jnp.allclose(out, ref, atol=1e-4, rtol=1e-4), "mismatch vs reference (case 1)"

    # Case 2: batch=3, position=5 -> rows=15, exercises the masked partial block,
    # with non-trivial scale/bias to exercise the affine part.
    w2 = 1.0 + 0.1 * jax.random.normal(k3, (d_model,), dtype=jnp.float32)
    b2 = 0.05 * jax.random.normal(k4, (d_model,), dtype=jnp.float32)
    residual2 = jax.random.normal(k2, (3, 5, d_model), dtype=jnp.float32)
    out2 = jax.block_until_ready(layer_norm(residual2, w2, b2, eps=eps))
    ref2 = _reference(residual2, w2, b2, eps)
    assert jnp.allclose(out2, ref2, atol=1e-4, rtol=1e-4), "mismatch vs reference (case 2)"

    # Case 3: bf16 input (exercises bf16 final-math path on v6e/v7x).
    residual3 = jax.random.normal(k5, (2, 8, d_model), dtype=jnp.float32)
    out3 = jax.block_until_ready(
        layer_norm(residual3.astype(jnp.bfloat16), w, b, eps=eps)).astype(jnp.float32)
    ref3 = _reference(residual3, w, b, eps)
    assert jnp.allclose(out3, ref3, atol=5e-2, rtol=5e-2), "mismatch vs reference (case 3)"

    print("KERNEL_OK")
</pallas_src>

<mosaic_0001>
module attributes {stable_mosaic.version = 11 : i64} {
  func.func @_layernorm_kernel(%arg0: i32, %arg1: memref<16x768xf32, #tpu.memory_space<vmem>>, %arg2: memref<1x768xf32, #tpu.memory_space<vmem>>, %arg3: memref<1x768xf32, #tpu.memory_space<vmem>>, %arg4: memref<16x768xf32, #tpu.memory_space<vmem>>) attributes {dimension_semantics = [#tpu.dimension_semantics<parallel>], iteration_bounds = array<i64: 1>, scalar_prefetch = 0 : i64, scratch_operands = 0 : i64, tpu.core_type = #tpu.core_type<tc>, window_params = [{transform_indices = @transform_0, window_bounds = array<i64: 16, 768>}, {pipeline_mode = #tpu.pipeline_mode<synchronous>, transform_indices = @transform_1, window_bounds = array<i64: 1, 768>}, {pipeline_mode = #tpu.pipeline_mode<synchronous>, transform_indices = @transform_2, window_bounds = array<i64: 1, 768>}, {transform_indices = @transform_3, window_bounds = array<i64: 16, 768>}]} {
    %c0 = arith.constant 0 : index
    %c0_0 = arith.constant 0 : index
    %0 = vector.load %arg1[%c0, %c0_0] : memref<16x768xf32, #tpu.memory_space<vmem>>, vector<16x768xf32>
    %cst = arith.constant dense<0.000000e+00> : vector<16xf32>
    %1 = vector.multi_reduction <add>, %0, %cst [1] : vector<16x768xf32> to vector<16xf32>
    %2 = vector.shape_cast %1 : vector<16xf32> to vector<16x1xf32>
    %cst_1 = arith.constant 7.680000e+02 : f32
    %3 = vector.broadcast %cst_1 : f32 to vector<16x1xf32>
    %4 = arith.divf %2, %3 : vector<16x1xf32>
    %5 = arith.mulf %0, %0 : vector<16x768xf32>
    %cst_2 = arith.constant dense<0.000000e+00> : vector<16xf32>
    %6 = vector.multi_reduction <add>, %5, %cst_2 [1] : vector<16x768xf32> to vector<16xf32>
    %7 = vector.shape_cast %6 : vector<16xf32> to vector<16x1xf32>
    %cst_3 = arith.constant 7.680000e+02 : f32
    %8 = vector.broadcast %cst_3 : f32 to vector<16x1xf32>
    %9 = arith.divf %7, %8 : vector<16x1xf32>
    %10 = arith.mulf %4, %4 : vector<16x1xf32>
    %11 = arith.subf %9, %10 : vector<16x1xf32>
    %cst_4 = arith.constant 0.000000e+00 : f32
    %12 = vector.broadcast %cst_4 : f32 to vector<16x1xf32>
    %13 = arith.maximumf %11, %12 : vector<16x1xf32>
    %cst_5 = arith.constant 9.99999974E-6 : f32
    %14 = vector.broadcast %cst_5 : f32 to vector<16x1xf32>
    %15 = arith.addf %13, %14 : vector<16x1xf32>
    %16 = math.rsqrt %15 : vector<16x1xf32>
    %17 = vector.broadcast %4 : vector<16x1xf32> to vector<16x768xf32>
    %18 = arith.subf %0, %17 : vector<16x768xf32>
    %19 = vector.broadcast %16 : vector<16x1xf32> to vector<16x768xf32>
    %20 = arith.mulf %18, %19 : vector<16x768xf32>
    %c0_6 = arith.constant 0 : index
    %c0_7 = arith.constant 0 : index
    %21 = vector.load %arg2[%c0_6, %c0_7] : memref<1x768xf32, #tpu.memory_space<vmem>>, vector<1x768xf32>
    %22 = vector.broadcast %21 : vector<1x768xf32> to vector<16x768xf32>
    %23 = arith.mulf %20, %22 : vector<16x768xf32>
    %c0_8 = arith.constant 0 : index
    %c0_9 = arith.constant 0 : index
    %24 = vector.load %arg3[%c0_8, %c0_9] : memref<1x768xf32, #tpu.memory_space<vmem>>, vector<1x768xf32>
    %25 = vector.broadcast %24 : vector<1x768xf32> to vector<16x768xf32>
    %26 = arith.addf %23, %25 : vector<16x768xf32>
    %c0_10 = arith.constant 0 : index
    %c0_11 = arith.constant 0 : index
    %27 = vector.load %arg4[%c0_10, %c0_11] : memref<16x768xf32, #tpu.memory_space<vmem>>, vector<16x768xf32>
    tpu.vector_store %arg4[%c0_10, %c0_11], %26 {strides = array<i32>} : memref<16x768xf32, #tpu.memory_space<vmem>>, vector<16x768xf32>,
    return
  }
  func.func @transform_0(%arg0: i32) -> (i32, i32) {
    %c0_i32 = arith.constant 0 : i32
    %c0_i32_0 = arith.constant 0 : i32
    return %arg0, %c0_i32 : i32, i32
  }
  func.func @transform_1(%arg0: i32) -> (i32, i32) {
    %c0_i32 = arith.constant 0 : i32
    %c0_i32_0 = arith.constant 0 : i32
    %c0_i32_1 = arith.constant 0 : i32
    return %c0_i32, %c0_i32_0 : i32, i32
  }
  func.func @transform_2(%arg0: i32) -> (i32, i32) {
    %c0_i32 = arith.constant 0 : i32
    %c0_i32_0 = arith.constant 0 : i32
    %c0_i32_1 = arith.constant 0 : i32
    return %c0_i32, %c0_i32_0 : i32, i32
  }
  func.func @transform_3(%arg0: i32) -> (i32, i32) {
    %c0_i32 = arith.constant 0 : i32
    %c0_i32_0 = arith.constant 0 : i32
    return %arg0, %c0_i32 : i32, i32
  }
}

</mosaic_0001>

<bundles_post_ra>
// kernel: tpu_custom_call.1
= control target key start
LH: loop header
LB: loop body
LE: loop exit
PB: predicated region body
PF: predicated region fallthrough
CT: control target
= control target key end

     0   :  { %8 = vsyncpa [#allocation3], 0  ;;  %s483_s0 = inlined_call_operand.hbm [shape: f32[16,768], index: 0, kind: input, shape index: {}]   ;;  %s484_s1 = inlined_call_operand.hbm [shape: f32[1,768], index: 1, kind: input, shape index: {}]   ;;  %s485_s2 = inlined_call_operand.vmem [shape: f32[1,768], index: 2, kind: input, shape index: {}]   ;;  %s486_s3 = inlined_call_operand.hbm [shape: f32[16,768], index: 3, kind: output, shape index: {}]  }
   0x1   :  { %9 = vsyncpa [#allocation6], 0 }
   0x2   :  { %10 = vsyncpa [#allocation4], 0  ;;  %s331_s12 = smov [#allocation2]   ;;  %s259_s16 = scalar_lea.hbm %s483_s0, 1536 }
   0x3   :  { %s16_s13 = sshll.u32 %s331_s12, 4  ;;  %p260_p0 = scmp.ne.s32.totalorder %s483_s0, %s259_s16  ;;  %s17_s13 = int_to_ptr.vmem [resolvable:$true] %s16_s13 }
   0x4   :  { %p263_p1 = scmp.lt.u32.totalorder %s259_s16, %s483_s0 }
   0x6   :  { %p265_p2 = pnand %p263_p1, %p260_p0 }
   0x8   :  { %268 = shalt.err (!%p265_p2)
}
   0x9   :  { %s269_s21 = scalar_lea.vmem %s17_s13, 1536  ;;  %p274_p4 = scmp.lt.s32.totalorder %s17_s13, %s17_s13 }
   0xa   :  { %p270_p3 = scmp.ne.s32.totalorder %s17_s13, %s269_s21  ;;  %p275_p5 = scmp.lt.s32.totalorder %s269_s21, %s269_s21 }
   0xc   :  { %p276_p6 = por %p275_p5, %p274_p4 }
   0xe   :  { %p277_p7 = pnand %p276_p6, %p270_p3 }
  0x10   :  { %280 = shalt.err (!%p277_p7)
}
  0x11   :  { %s332_s22 = smov 768   ;;  %s333_s23 = smov 48  }
  0x12   :  { %22 = dma.hbm_to_vmem [thread:$0]  %s483_s0, 1536, %s17_s13, [#allocation3], %s332_s22, %s332_s22, %s333_s23  }
  0x13   :  { %s334_s26 = smov [#allocation5]   ;;  %s281_s30 = scalar_lea.hbm %s484_s1, 96 }
  0x14   :  { %s29_s27 = sshll.u32 %s334_s26, 4  ;;  %p282_p8 = scmp.ne.s32.totalorder %s484_s1, %s281_s30  ;;  %s30_s27 = int_to_ptr.vmem [resolvable:$true] %s29_s27 }
  0x15   :  { %p285_p9 = scmp.lt.u32.totalorder %s281_s30, %s484_s1 }
  0x17   :  { %p287_p10 = pnand %p285_p9, %p282_p8 }
  0x19   :  { %290 = shalt.err (!%p287_p10)
}
  0x1a   :  { %s291_s8 = scalar_lea.vmem %s30_s27, 96  ;;  %p296_p12 = scmp.lt.s32.totalorder %s30_s27, %s30_s27 }
  0x1b   :  { %p292_p11 = scmp.ne.s32.totalorder %s30_s27, %s291_s8  ;;  %p297_p13 = scmp.lt.s32.totalorder %s291_s8, %s291_s8 }
  0x1d   :  { %p298_p0 = por %p297_p13, %p296_p12 }
  0x1f   :  { %p299_p1 = pnand %p298_p0, %p292_p11 }
  0x21   :  { %302 = shalt.err (!%p299_p1)
}
  0x22   :  { %32 = dma.hbm_to_vmem [thread:$0]  %s484_s1, 96, %s30_s27, [#allocation6]  }
  0x23   :  { %325 = dma.done.wait [#allocation3], 1536  }
  0x24   :  { %326 = vsyncadd [#allocation3], 4294965760 }
  0x25   :  { %327 = dma.done.wait [#allocation6], 96  }
  0x26   :  { %328 = vsyncadd [#allocation6], 4294967200  ;;  %v383_v0 = vld [vmem:[#allocation2] sm:$0xff]  ;;  %v385_v1 = vld [vmem:[#allocation2 + $0x8] sm:$0xff]  ;;  %v134_v53 = vlaneseq }
  0x27   :  { %v387_v2 = vld [vmem:[#allocation2 + $0x10] sm:$0xff]  ;;  %v389_v3 = vld [vmem:[#allocation2 + $0x18] sm:$0xff]  ;;  %v391_v4 = vld [vmem:[#allocation2 + $0x20] sm:$0xff]  ;;  %v53_v5 = vadd.f32 %v385_v1, %v383_v0  ;;  %v70_v6 = vmul.f32 %v383_v0, %v383_v0  ;;  %v71_v7 = vmul.f32 %v385_v1, %v385_v1 }
  0x28   :  { %v72_v8 = vmul.f32 %v387_v2, %v387_v2  ;;  %v73_v9 = vmul.f32 %v389_v3, %v389_v3  ;;  %v403_v10 = vld [vmem:[#allocation2 + $0x30] sm:$0xff]  ;;  %v405_v11 = vld [vmem:[#allocation2 + $0x38] sm:$0xff]  ;;  %v407_v12 = vld [vmem:[#allocation2 + $0x40] sm:$0xff]  ;;  %v74_v22 = vmul.f32 %v391_v4, %v391_v4  ;;  %v135_v58 = vshrl.u32 %v134_v53, 7 }
  0x29   :  { %v54_v13 = vadd.f32 %v53_v5, %v387_v2  ;;  %v82_v14 = vadd.f32 %v71_v7, %v70_v6  ;;  %v410_v15 = vld [vmem:[#allocation2 + $0x48] sm:$0xff]  ;;  %v60_v16 = vadd.f32 %v405_v11, %v403_v10  ;;  %v76_v17 = vmul.f32 %v403_v10, %v403_v10  ;;  %v425_v24 = vld [vmem:[#allocation2 + $0x50] sm:$0xff]  ;;  %v433_v31 = vld [vmem:[#allocation2 + $0x58] sm:$0xff] }
  0x2a   :  { %v416_v18 = vld [vmem:[#allocation2 + $0x28] sm:$0xff]  ;;  %v77_v19 = vmul.f32 %v405_v11, %v405_v11  ;;  %v78_v20 = vmul.f32 %v407_v12, %v407_v12  ;;  %v79_v26 = vmul.f32 %v410_v15, %v410_v15  ;;  %v80_v33 = vmul.f32 %v425_v24, %v425_v24  ;;  %v132_v7 = vld [vmem:[#allocation5] sm:$0x3f] }
  0x2b   :  { %v55_v21 = vadd.f32 %v54_v13, %v389_v3  ;;  %v83_v23 = vadd.f32 %v82_v14, %v72_v8  ;;  %v61_v25 = vadd.f32 %v60_v16, %v407_v12  ;;  %v75_v29 = vmul.f32 %v416_v18, %v416_v18  ;;  %v176_v13 = vld [vmem:[%s485_s2] sm:$0x3f]  ;;  %s335_s2 = smov [#allocation7]  }
  0x2c   :  { %v89_v27 = vadd.f32 %v77_v19, %v76_v17  ;;  %v81_v38 = vmul.f32 %v433_v31, %v433_v31  ;;  %v136_v61 = vsub.s32 0, %v135_v58  ;;  %v140_v62 = vsub.s32 1, %v135_v58  ;;  %s237_s11 = sshll.u32 %s335_s2, 4  ;;  %s238_s11 = int_to_ptr.vmem [resolvable:$true] %s237_s11 }
  0x2d   :  { %v56_v28 = vadd.f32 %v55_v21, %v391_v4  ;;  %v84_v30 = vadd.f32 %v83_v23, %v73_v9  ;;  %v62_v32 = vadd.f32 %v61_v25, %v410_v15  ;;  %v144_v63 = vsub.s32 2, %v135_v58  ;;  %s303_s12 = scalar_lea.vmem %s238_s11, 1536  ;;  %p308_p3 = scmp.lt.s32.totalorder %s238_s11, %s238_s11 }
  0x2e   :  { %v90_v34 = vadd.f32 %v89_v27, %v78_v20  ;;  %v148_v5 = vsub.s32 3, %v135_v58  ;;  %v152_v8 = vsub.s32 4, %v135_v58  ;;  %v156_v9 = vsub.s32 5, %v135_v58  ;;  %p304_p2 = scmp.ne.s32.totalorder %s238_s11, %s303_s12  ;;  %p309_p4 = scmp.lt.s32.totalorder %s303_s12, %s303_s12 }
  0x2f   :  { %v57_v35 = vadd.f32 %v56_v28, %v416_v18  ;;  %v85_v36 = vadd.f32 %v84_v30, %v74_v22  ;;  %v63_v37 = vadd.f32 %v62_v32, %v425_v24  ;;  %v137_v14 = vrot.slane %v132_v7, %v136_v61 }
  0x30   :  { %v91_v39 = vadd.f32 %v90_v34, %v79_v26  ;;  %v141_v16 = vrot.slane %v132_v7, %v140_v62  ;;  %v145_v17 = vrot.slane %v132_v7, %v144_v63  ;;  %v149_v19 = vrot.slane %v132_v7, %v148_v5  ;;  %p310_p5 = por %p309_p4, %p308_p3 }
  0x31   :  { %58 = vadd.xlane.f32.xlu0 %v57_v35  ;;  %v86_v40 = vadd.f32 %v85_v36, %v75_v29  ;;  %v64_v41 = vadd.f32 %v63_v37, %v433_v31  ;;  %v153_v20 = vrot.slane %v132_v7, %v152_v8  ;;  %v157_v21 = vrot.slane %v132_v7, %v156_v9 }
  0x32   :  { %v92_v42 = vadd.f32 %v91_v39, %v80_v33  ;;  %v181_v22 = vrot.slane %v176_v13, %v136_v61  ;;  %v185_v23 = vrot.slane %v176_v13, %v140_v62  ;;  %v189_v25 = vrot.slane %v176_v13, %v144_v63  ;;  %p311_p6 = pnand %p310_p5, %p304_p2 }
  0x33   :  { %87 = vadd.xlane.f32.xlu1 %v86_v40  ;;  %v193_v26 = vrot.slane %v176_v13, %v148_v5  ;;  %v197_v27 = vrot.slane %v176_v13, %v152_v8  ;;  %v201_v28 = vrot.slane %v176_v13, %v156_v9 }
  0x34   :  { %v93_v43 = vadd.f32 %v92_v42, %v81_v38 }
  0x35   :  { %65 = vadd.xlane.f32.xlu0 %v64_v41 }
  0x37   :  { %94 = vadd.xlane.f32.xlu1 %v93_v43 }
  0xbe   :  { %v59_v44 = vpop.xlane.xlu0 %58 }
  0xbf   :  { %v68_v45 = vmul.f32 0.0013020834, %v59_v44 }
  0xc0   :  { %v88_v46 = vpop.xlane.xlu1 %87 }
  0xc1   :  { %v96_v47 = vmul.f32 0.0013020834, %v88_v46  ;;  %v98_v48 = vmul.f32 %v68_v45, %v68_v45  ;;  %v108_v29 = vsub.f32 %v383_v0, %v68_v45  ;;  %v109_v30 = vsub.f32 %v385_v1, %v68_v45 }
  0xc2   :  { %v66_v49 = vpop.xlane.xlu0 %65  ;;  %v110_v32 = vsub.f32 %v387_v2, %v68_v45  ;;  %v111_v33 = vsub.f32 %v389_v3, %v68_v45  ;;  %v112_v35 = vsub.f32 %v391_v4, %v68_v45  ;;  %v113_v36 = vsub.f32 %v416_v18, %v68_v45 }
  0xc3   :  { %v443_v50 = vmul.f32 0.0013020834, %v66_v49  ;;  %v100_v51 = vsub.f32 %v96_v47, %v98_v48 }
  0xc4   :  { %v95_v52 = vpop.xlane.xlu1 %94 }
  0xc5   :  { %v102_v54 = vmax.f32 %v100_v51, 0.0  ;;  %v97_v55 = vmul.f32 0.0013020834, %v95_v52  ;;  %v99_v56 = vmul.f32 %v443_v50, %v443_v50  ;;  %v114_v37 = vsub.f32 %v403_v10, %v443_v50 }
  0xc6   :  { %v115_v38 = vsub.f32 %v405_v11, %v443_v50  ;;  %v116_v1 = vsub.f32 %v407_v12, %v443_v50  ;;  %v117_v2 = vsub.f32 %v410_v15, %v443_v50  ;;  %v118_v10 = vsub.f32 %v425_v24, %v443_v50 }
  0xc7   :  { %v104_v57 = vadd.f32 1e-05, %v102_v54  ;;  %v101_v59 = vsub.f32 %v97_v55, %v99_v56  ;;  %v119_v11 = vsub.f32 %v433_v31, %v443_v50 }
  0xc9   :  { %255 = vrsqrt.f32 %v104_v57  ;;  %v103_v60 = vmax.f32 %v101_v59, 0.0 }
  0xcb   :  { %v105_v6 = vadd.f32 1e-05, %v103_v60 }
  0xcd   :  { %257 = vrsqrt.f32 %v105_v6 }
  0xd3   :  { %v256_v34 = vpop.eup %255 }
  0xd4   :  { %v120_v39 = vmul.f32 %v256_v34, %v108_v29  ;;  %v121_v40 = vmul.f32 %v256_v34, %v109_v30  ;;  %v122_v0 = vmul.f32 %v256_v34, %v110_v32  ;;  %v123_v41 = vmul.f32 %v256_v34, %v111_v33 }
  0xd5   :  { %v124_v3 = vmul.f32 %v256_v34, %v112_v35  ;;  %v125_v4 = vmul.f32 %v256_v34, %v113_v36 }
  0xd6   :  { %v164_v42 = vmul.f32 %v137_v14, %v120_v39  ;;  %v165_v18 = vmul.f32 %v141_v16, %v121_v40  ;;  %v166_v43 = vmul.f32 %v145_v17, %v122_v0  ;;  %v167_v44 = vmul.f32 %v149_v19, %v123_v41 }
  0xd7   :  { %v168_v45 = vmul.f32 %v153_v20, %v124_v3  ;;  %v169_v46 = vmul.f32 %v157_v21, %v125_v4  ;;  %v258_v47 = vpop.eup %257 }
  0xd8   :  { %v208_v48 = vadd.f32 %v181_v22, %v164_v42  ;;  %v209_v12 = vadd.f32 %v185_v23, %v165_v18  ;;  %v210_v49 = vadd.f32 %v189_v25, %v166_v43  ;;  %v211_v51 = vadd.f32 %v193_v26, %v167_v44 }
  0xd9   :  { %v126_v15 = vmul.f32 %v258_v47, %v114_v37  ;;  %v127_v52 = vmul.f32 %v258_v47, %v115_v38  ;;  %v128_v53 = vmul.f32 %v258_v47, %v116_v1  ;;  %v129_v54 = vmul.f32 %v258_v47, %v117_v2 }
  0xda   :  { %v130_v55 = vmul.f32 %v258_v47, %v118_v10  ;;  %v131_v56 = vmul.f32 %v258_v47, %v119_v11  ;;  %v212_v57 = vadd.f32 %v197_v27, %v168_v45  ;;  %v213_v58 = vadd.f32 %v201_v28, %v169_v46  ;;  %220 = vst [vmem:[#allocation7] sm:$0xff] %v208_v48 }
  0xdb   :  { %221 = vst [vmem:[#allocation7 + $0x8] sm:$0xff] %v209_v12  ;;  %222 = vst [vmem:[#allocation7 + $0x10] sm:$0xff] %v210_v49  ;;  %v170_v24 = vmul.f32 %v137_v14, %v126_v15  ;;  %v171_v31 = vmul.f32 %v141_v16, %v127_v52  ;;  %v172_v50 = vmul.f32 %v145_v17, %v128_v53 }
  0xdc   :  { %223 = vst [vmem:[#allocation7 + $0x18] sm:$0xff] %v211_v51  ;;  %v173_v59 = vmul.f32 %v149_v19, %v129_v54  ;;  %v174_v60 = vmul.f32 %v153_v20, %v130_v55  ;;  %v175_v61 = vmul.f32 %v157_v21, %v131_v56  ;;  %224 = vst [vmem:[#allocation7 + $0x20] sm:$0xff] %v212_v57 }
  0xdd   :  { %225 = vst [vmem:[#allocation7 + $0x28] sm:$0xff] %v213_v58  ;;  %v214_v62 = vadd.f32 %v181_v22, %v170_v24  ;;  %v215_v63 = vadd.f32 %v185_v23, %v171_v31  ;;  %v216_v5 = vadd.f32 %v189_v25, %v172_v50 }
  0xde   :  { %v217_v6 = vadd.f32 %v193_v26, %v173_v59  ;;  %v218_v7 = vadd.f32 %v197_v27, %v174_v60  ;;  %v219_v8 = vadd.f32 %v201_v28, %v175_v61 }
  0xdf   :  { %226 = vst [vmem:[#allocation7 + $0x30] sm:$0xff] %v214_v62  ;;  %227 = vst [vmem:[#allocation7 + $0x38] sm:$0xff] %v215_v63 }
  0xe0   :  { %228 = vst [vmem:[#allocation7 + $0x40] sm:$0xff] %v216_v5  ;;  %229 = vst [vmem:[#allocation7 + $0x48] sm:$0xff] %v217_v6 }
  0xe1   :  { %230 = vst [vmem:[#allocation7 + $0x50] sm:$0xff] %v218_v7  ;;  %231 = vst [vmem:[#allocation7 + $0x58] sm:$0xff] %v219_v8 }
  0xe2   :  { %314 = shalt.err (!%p311_p6)
}
  0xe3   :  { %s315_s15 = scalar_lea.hbm %s486_s3, 1536 }
  0xe4   :  { %p316_p7 = scmp.ne.s32.totalorder %s486_s3, %s315_s15  ;;  %p319_p8 = scmp.lt.u32.totalorder %s315_s15, %s486_s3 }
  0xe6   :  { %p321_p9 = pnand %p319_p8, %p316_p7 }
  0xe8   :  { %324 = shalt.err (!%p321_p9)
}
  0xe9   :  { %243 = dma.vmem_to_hbm [thread:$0]  %s238_s11, 1536, %s486_s3, [#allocation4], %s332_s22, %s332_s22, %s333_s23  }
  0xea   :  { %329 = dma.done.wait [#allocation4], 1536  }
  0xeb   :  { %330 = vsyncadd [#allocation4], 4294965760 }
  0xec   :  { %247 = vsyncpa [#allocation3], 1 }
  0xed   :  { %248 = vsyncpa [#allocation6], 1 }
  0xee   :  { %249 = vsyncpa [#allocation4], 1 }

</bundles_post_ra>
